<compile_context>
chip_gen: v7x
topology: tpu7x:2x2x1
jax: 0.10.0
libtpu: 0.0.40
codegen_flags: <defaults>
</compile_context>

<pallas_src>
import jax
import jax.numpy as jnp
from jax.experimental import pallas as pl
from jax.experimental.pallas import tpu as pltpu

_MIB = 1024 * 1024


# --------------------------------------------------------------- kernels ----

def _fused_kernel(x_ref, w1_ref, b1_ref, w2_ref, b2_ref, o_ref):
    # x_ref / o_ref: (1, HW, C) channels-last slab for one sample.
    pooled = jnp.mean(x_ref[...], axis=1)                               # (1, C)
    h = jnp.dot(pooled, w1_ref[...], preferred_element_type=jnp.float32)
    h = jnp.maximum(h + b1_ref[...], 0.0)                               # (1, Cr)
    s = jnp.dot(h, w2_ref[...], preferred_element_type=jnp.float32) + b2_ref[...]
    scale = jax.nn.sigmoid(s)                                           # (1, C)
    # Re-read x_ref (short live range) and lane-broadcast the scale.
    o_ref[...] = x_ref[...] * scale[:, None, :]


def _make_pool_kernel(hw, thw, num_t):
    needs_mask = (hw % thw) != 0
    inv_hw = 1.0 / float(hw)

    def pool_kernel(x_ref, pooled_ref):
        # x_ref: (1, thw, C); pooled_ref: (1, 1, C) accumulator, resident
        # across the "arbitrary" HW-tile axis.
        t = pl.program_id(1)

        @pl.when(t == 0)
        def _():
            pooled_ref[...] = jnp.zeros_like(pooled_ref)

        x = x_ref[...]
        if needs_mask:
            row = t * thw + jax.lax.broadcasted_iota(jnp.int32, x.shape, 1)
            x = jnp.where(row < hw, x, 0.0)
        pooled_ref[...] += jnp.sum(x, axis=1, keepdims=True)

        @pl.when(t == num_t - 1)
        def _():
            pooled_ref[...] = pooled_ref[...] * inv_hw

    return pool_kernel


def _fc_kernel(pooled_ref, w1_ref, b1_ref, w2_ref, b2_ref, scale_ref):
    # Batched squeeze/excite MLP: (N, C) -> ReLU -> (N, C) -> sigmoid.
    h = jnp.dot(pooled_ref[...], w1_ref[...], preferred_element_type=jnp.float32)
    h = jnp.maximum(h + b1_ref[...], 0.0)
    s = jnp.dot(h, w2_ref[...], preferred_element_type=jnp.float32) + b2_ref[...]
    scale_ref[...] = jax.nn.sigmoid(s)


def _scale_mul_kernel(x_ref, s_ref, o_ref):
    # x_ref / o_ref: (1, thw, C); s_ref: (1, 1, C) -> lane-broadcast multiply.
    o_ref[...] = x_ref[...] * s_ref[...]


# --------------------------------------------------------------- wrapper ----

def _pick_hw_tile(hw, c, target_bytes=2 * _MIB):
    """Largest multiple-of-8 row tile whose (thw, C) f32 block is ~target_bytes."""
    rows = max(8, (target_bytes // (c * 4)) // 8 * 8)
    return int(min(hw, rows))


def se_layer(x, w1, b1, w2, b2, *, force_split=False, hw_tile=None):
    """SELayer forward. x: [N, C, H, W] float32 -> [N, C, H, W] float32."""
    N, C, H, W = x.shape
    HW = H * W
    Cr = w1.shape[1]

    # Channels-last inside the kernels: C on lanes, HW on sublanes.
    x_cl = jnp.transpose(x.reshape(N, C, HW), (0, 2, 1))        # (N, HW, C)
    b1_2d = b1.reshape(1, Cr)
    b2_2d = b2.reshape(1, C)

    # Explicit VMEM budget (double-buffered input AND output sample blocks).
    sample_bytes = HW * C * 4
    weight_bytes = 2 * (C * Cr + Cr + Cr * C + C) * 4
    fused_vmem_needed = 4 * sample_bytes + weight_bytes + 2 * _MIB
    use_fused = (not force_split) and (N >= 2) and (fused_vmem_needed <= 32 * _MIB)

    if use_fused:
        out_cl = pl.pallas_call(
            _fused_kernel,
            out_shape=jax.ShapeDtypeStruct((N, HW, C), jnp.float32),
            grid=(N,),
            in_specs=[
                pl.BlockSpec((1, HW, C), lambda n: (n, 0, 0)),   # x (per sample)
                pl.BlockSpec((C, Cr), lambda n: (0, 0)),         # w1
                pl.BlockSpec((1, Cr), lambda n: (0, 0)),         # b1
                pl.BlockSpec((Cr, C), lambda n: (0, 0)),         # w2
                pl.BlockSpec((1, C), lambda n: (0, 0)),          # b2
            ],
            out_specs=pl.BlockSpec((1, HW, C), lambda n: (n, 0, 0)),
            compiler_params=pltpu.CompilerParams(
                dimension_semantics=("parallel",),
                vmem_limit_bytes=32 * _MIB),
        )(x_cl, w1, b1_2d, w2, b2_2d)
    else:
        # Pick an HW tile: multiple of 8 (sublane) or the full spatial extent.
        thw = int(hw_tile) if hw_tile is not None else _pick_hw_tile(HW, C)
        if thw >= HW:
            thw = HW
        elif thw % 8 != 0:
            thw = max(8, thw // 8 * 8)
            if thw >= HW:
                thw = HW
        num_t = -(-HW // thw)
        blk_bytes = thw * C * 4
        vmem_limit = int(min(32 * _MIB, max(16 * _MIB, 8 * blk_bytes + 2 * _MIB)))

        # 1) Global average pool, tiled over HW with an accumulator output.
        pooled3 = pl.pallas_call(
            _make_pool_kernel(HW, thw, num_t),
            out_shape=jax.ShapeDtypeStruct((N, 1, C), jnp.float32),
            grid=(N, num_t),
            in_specs=[pl.BlockSpec((1, thw, C), lambda n, t: (n, t, 0))],
            out_specs=pl.BlockSpec((1, 1, C), lambda n, t: (n, 0, 0)),
            compiler_params=pltpu.CompilerParams(
                dimension_semantics=("parallel", "arbitrary"),
                vmem_limit_bytes=vmem_limit),
        )(x_cl)

        # 2) Tiny batched FC1 -> ReLU -> FC2 -> sigmoid (M = N on the MXU).
        scale = pl.pallas_call(
            _fc_kernel,
            out_shape=jax.ShapeDtypeStruct((N, C), jnp.float32),
            grid=(1,),
            in_specs=[
                pl.BlockSpec((N, C), lambda i: (0, 0)),
                pl.BlockSpec((C, Cr), lambda i: (0, 0)),
                pl.BlockSpec((1, Cr), lambda i: (0, 0)),
                pl.BlockSpec((Cr, C), lambda i: (0, 0)),
                pl.BlockSpec((1, C), lambda i: (0, 0)),
            ],
            out_specs=pl.BlockSpec((N, C), lambda i: (0, 0)),
        )(pooled3.reshape(N, C), w1, b1_2d, w2, b2_2d)

        # 3) Freely tiled lane-broadcast multiply (both grid axes parallel).
        out_cl = pl.pallas_call(
            _scale_mul_kernel,
            out_shape=jax.ShapeDtypeStruct((N, HW, C), jnp.float32),
            grid=(N, num_t),
            in_specs=[
                pl.BlockSpec((1, thw, C), lambda n, t: (n, t, 0)),
                pl.BlockSpec((1, 1, C), lambda n, t: (n, 0, 0)),
            ],
            out_specs=pl.BlockSpec((1, thw, C), lambda n, t: (n, t, 0)),
            compiler_params=pltpu.CompilerParams(
                dimension_semantics=("parallel", "parallel"),
                vmem_limit_bytes=vmem_limit),
        )(x_cl, scale.reshape(N, 1, C))

    return jnp.transpose(out_cl, (0, 2, 1)).reshape(N, C, H, W)


# ----------------------------------------------------------------- params ----

def init_params(key, in_channels, reduction_ratio):
    """Deterministic init mimicking nn.Linear default (uniform +-1/sqrt(fan_in))."""
    hidden = in_channels // reduction_ratio
    k1, k2, k3, k4 = jax.random.split(key, 4)
    bound1 = 1.0 / jnp.sqrt(in_channels)
    bound2 = 1.0 / jnp.sqrt(hidden)
    # Stored already transposed for y = x @ W (PyTorch Linear does x @ W.T).
    w1 = jax.random.uniform(k1, (in_channels, hidden), jnp.float32, -bound1, bound1)
    b1 = jax.random.uniform(k2, (hidden,), jnp.float32, -bound1, bound1)
    w2 = jax.random.uniform(k3, (hidden, in_channels), jnp.float32, -bound2, bound2)
    b2 = jax.random.uniform(k4, (in_channels,), jnp.float32, -bound2, bound2)
    return w1, b1, w2, b2


def _reference(x, w1, b1, w2, b2):
    pooled = jnp.mean(x, axis=(2, 3))
    h = jnp.maximum(pooled @ w1 + b1, 0.0)
    scale = jax.nn.sigmoid(h @ w2 + b2)
    return x * scale[:, :, None, None]


if __name__ == "__main__":
    key = jax.random.PRNGKey(0)
    k_x, k_p, k_x2, k_p2 = jax.random.split(key, 4)

    # Test 1: default (fused, channels-last) path.
    N, C, H, W = 2, 4, 16, 16
    reduction_ratio = 2
    x = jax.random.normal(k_x, (N, C, H, W), jnp.float32)
    w1, b1, w2, b2 = init_params(k_p, C, reduction_ratio)

    out = se_layer(x, w1, b1, w2, b2)
    jax.block_until_ready(out)
    ref = _reference(x, w1, b1, w2, b2)
    assert jnp.allclose(out, ref, atol=1e-5, rtol=1e-5), "fused path mismatch"

    # Test 2: split path (pool / batched FC / tiled multiply) with a partial
    # HW tile (HW=25, tile=8) to exercise masked pooling and masked stores.
    N2, C2, H2, W2 = 2, 8, 5, 5
    x2 = jax.random.normal(k_x2, (N2, C2, H2, W2), jnp.float32)
    p2 = init_params(k_p2, C2, 2)
    out2 = se_layer(x2, *p2, force_split=True, hw_tile=8)
    jax.block_until_ready(out2)
    ref2 = _reference(x2, *p2)
    assert jnp.allclose(out2, ref2, atol=1e-5, rtol=1e-5), "split path mismatch"

    print("KERNEL_OK")
</pallas_src>

<mosaic_0001>
module attributes {stable_mosaic.version = 11 : i64} {
  func.func @_fused_kernel(%arg0: i32, %arg1: memref<1x256x4xf32, #tpu.memory_space<vmem>>, %arg2: memref<4x2xf32, #tpu.memory_space<vmem>>, %arg3: memref<1x2xf32, #tpu.memory_space<vmem>>, %arg4: memref<2x4xf32, #tpu.memory_space<vmem>>, %arg5: memref<1x4xf32, #tpu.memory_space<vmem>>, %arg6: memref<1x256x4xf32, #tpu.memory_space<vmem>>) attributes {dimension_semantics = [#tpu.dimension_semantics<parallel>], iteration_bounds = array<i64: 2>, scalar_prefetch = 0 : i64, scratch_operands = 0 : i64, tpu.core_type = #tpu.core_type<tc>, window_params = [{transform_indices = @transform_0, window_bounds = array<i64: 1, 256, 4>}, {pipeline_mode = #tpu.pipeline_mode<synchronous>, transform_indices = @transform_1, window_bounds = array<i64: 4, 2>}, {pipeline_mode = #tpu.pipeline_mode<synchronous>, transform_indices = @transform_2, window_bounds = array<i64: 1, 2>}, {pipeline_mode = #tpu.pipeline_mode<synchronous>, transform_indices = @transform_3, window_bounds = array<i64: 2, 4>}, {pipeline_mode = #tpu.pipeline_mode<synchronous>, transform_indices = @transform_4, window_bounds = array<i64: 1, 4>}, {transform_indices = @transform_5, window_bounds = array<i64: 1, 256, 4>}]} {
    %c0 = arith.constant 0 : index
    %c0_0 = arith.constant 0 : index
    %c0_1 = arith.constant 0 : index
    %0 = vector.load %arg1[%c0, %c0_0, %c0_1] : memref<1x256x4xf32, #tpu.memory_space<vmem>>, vector<1x256x4xf32>
    %cst = arith.constant dense<0.000000e+00> : vector<1x4xf32>
    %1 = vector.multi_reduction <add>, %0, %cst [1] : vector<1x256x4xf32> to vector<1x4xf32>
    %cst_2 = arith.constant 2.560000e+02 : f32
    %2 = vector.broadcast %cst_2 : f32 to vector<1x4xf32>
    %3 = arith.divf %1, %2 : vector<1x4xf32>
    %c0_3 = arith.constant 0 : index
    %c0_4 = arith.constant 0 : index
    %4 = vector.load %arg2[%c0_3, %c0_4] : memref<4x2xf32, #tpu.memory_space<vmem>>, vector<4x2xf32>
    %cst_5 = arith.constant dense<0.000000e+00> : vector<1x2xf32>
    %5 = tpu.matmul %3, %4, %cst_5 {dimension_numbers = #tpu.dot_dimension_numbers<[1], [0], [0], [1], [0, 0, 1, 1], [], []>} : vector<1x4xf32>, vector<4x2xf32>, vector<1x2xf32> -> vector<1x2xf32>
    %c0_6 = arith.constant 0 : index
    %c0_7 = arith.constant 0 : index
    %6 = vector.load %arg3[%c0_6, %c0_7] : memref<1x2xf32, #tpu.memory_space<vmem>>, vector<1x2xf32>
    %7 = arith.addf %5, %6 : vector<1x2xf32>
    %cst_8 = arith.constant 0.000000e+00 : f32
    %8 = vector.broadcast %cst_8 : f32 to vector<1x2xf32>
    %9 = arith.maximumf %7, %8 : vector<1x2xf32>
    %c0_9 = arith.constant 0 : index
    %c0_10 = arith.constant 0 : index
    %10 = vector.load %arg4[%c0_9, %c0_10] : memref<2x4xf32, #tpu.memory_space<vmem>>, vector<2x4xf32>
    %cst_11 = arith.constant dense<0.000000e+00> : vector<1x4xf32>
    %11 = tpu.matmul %9, %10, %cst_11 {dimension_numbers = #tpu.dot_dimension_numbers<[1], [0], [0], [1], [0, 0, 1, 1], [], []>} : vector<1x2xf32>, vector<2x4xf32>, vector<1x4xf32> -> vector<1x4xf32>
    %c0_12 = arith.constant 0 : index
    %c0_13 = arith.constant 0 : index
    %12 = vector.load %arg5[%c0_12, %c0_13] : memref<1x4xf32, #tpu.memory_space<vmem>>, vector<1x4xf32>
    %13 = arith.addf %11, %12 : vector<1x4xf32>
    %14 = arith.negf %13 : vector<1x4xf32>
    %15 = math.exp %14 : vector<1x4xf32>
    %cst_14 = arith.constant 1.000000e+00 : f32
    %16 = vector.broadcast %cst_14 : f32 to vector<1x4xf32>
    %17 = arith.addf %16, %15 : vector<1x4xf32>
    %18 = arith.divf %16, %17 : vector<1x4xf32>
    %c0_15 = arith.constant 0 : index
    %c0_16 = arith.constant 0 : index
    %c0_17 = arith.constant 0 : index
    %19 = vector.load %arg1[%c0_15, %c0_16, %c0_17] : memref<1x256x4xf32, #tpu.memory_space<vmem>>, vector<1x256x4xf32>
    %20 = vector.shape_cast %18 : vector<1x4xf32> to vector<1x1x4xf32>
    %21 = vector.broadcast %20 : vector<1x1x4xf32> to vector<1x256x4xf32>
    %22 = arith.mulf %19, %21 : vector<1x256x4xf32>
    %c0_18 = arith.constant 0 : index
    %c0_19 = arith.constant 0 : index
    %c0_20 = arith.constant 0 : index
    %23 = vector.load %arg6[%c0_18, %c0_19, %c0_20] : memref<1x256x4xf32, #tpu.memory_space<vmem>>, vector<1x256x4xf32>
    tpu.vector_store %arg6[%c0_18, %c0_19, %c0_20], %22 {strides = array<i32>} : memref<1x256x4xf32, #tpu.memory_space<vmem>>, vector<1x256x4xf32>,
    return
  }
  func.func @transform_0(%arg0: i32) -> (i32, i32, i32) {
    %c0_i32 = arith.constant 0 : i32
    %c0_i32_0 = arith.constant 0 : i32
    %c0_i32_1 = arith.constant 0 : i32
    return %arg0, %c0_i32, %c0_i32_0 : i32, i32, i32
  }
  func.func @transform_1(%arg0: i32) -> (i32, i32) {
    %c0_i32 = arith.constant 0 : i32
    %c0_i32_0 = arith.constant 0 : i32
    %c0_i32_1 = arith.constant 0 : i32
    return %c0_i32, %c0_i32_0 : i32, i32
  }
  func.func @transform_2(%arg0: i32) -> (i32, i32) {
    %c0_i32 = arith.constant 0 : i32
    %c0_i32_0 = arith.constant 0 : i32
    %c0_i32_1 = arith.constant 0 : i32
    return %c0_i32, %c0_i32_0 : i32, i32
  }
  func.func @transform_3(%arg0: i32) -> (i32, i32) {
    %c0_i32 = arith.constant 0 : i32
    %c0_i32_0 = arith.constant 0 : i32
    %c0_i32_1 = arith.constant 0 : i32
    return %c0_i32, %c0_i32_0 : i32, i32
  }
  func.func @transform_4(%arg0: i32) -> (i32, i32) {
    %c0_i32 = arith.constant 0 : i32
    %c0_i32_0 = arith.constant 0 : i32
    %c0_i32_1 = arith.constant 0 : i32
    return %c0_i32, %c0_i32_0 : i32, i32
  }
  func.func @transform_5(%arg0: i32) -> (i32, i32, i32) {
    %c0_i32 = arith.constant 0 : i32
    %c0_i32_0 = arith.constant 0 : i32
    %c0_i32_1 = arith.constant 0 : i32
    return %arg0, %c0_i32, %c0_i32_0 : i32, i32, i32
  }
}

</mosaic_0001>

<bundles_post_ra>
// kernel: tpu_custom_call.1
= control target key start
LH: loop header
LB: loop body
LE: loop exit
PB: predicated region body
PF: predicated region fallthrough
CT: control target
= control target key end

     0   :  { %s704_s18 = smov 0   ;;  %s1001_s0 = inlined_call_operand.vmem [shape: f32[2,256,4], index: 0, kind: input, shape index: {}]   ;;  %s1002_s1 = inlined_call_operand.vmem [shape: f32[4,2], index: 1, kind: input, shape index: {}]   ;;  %s1003_s2 = inlined_call_operand.vmem [shape: f32[1,2], index: 2, kind: input, shape index: {}]   ;;  %s1004_s3 = inlined_call_operand.vmem [shape: f32[2,4], index: 3, kind: input, shape index: {}]   ;;  %s1005_s4 = inlined_call_operand.vmem [shape: f32[1,4], index: 4, kind: input, shape index: {}]   ;;  %s1006_s5 = inlined_call_operand.vmem [shape: f32[2,256,4], index: 5, kind: output, shape index: {}]  }
   0x1 LB: > { %s618_s19 = sadd.s32 4294967295, %s670_s18   ;;  %p622_p0 = scmp.ge.s32.totalorder %s670_s18, 1  ;;  %s670_s18 = sphi %s704_s18, %s15_s18  }
   0x2   : > { %p187_p1 = scmp.lt.s32.totalorder %s670_s18, 3 }
   0x4   : > { %p188_p2 = pnand %p622_p0, %p187_p1 }
   0x5   : > { %v329_v0 = vld [vmem:[%s1002_s1] sm:$0xf] (!%p188_p2)  ;;  %vm334_vm0 = vcmask (!%p188_p2), 1043456   ;;  %p215_p3 = scmp.lt.s32.totalorder (!%p188_p2), %s618_s19, 1  ;;  %v672_v1 = vmov (!%p188_p2), 0.0   ;;  %vm673_vm1 = vmmov (!%p188_p2), 0  }
   0x6   : > { %191 = sbr.rel (%p188_p2) target bundleno = 571 (0x23b), region = 40  ;;  %640 = vmatprep.subr.mxu0 (!%p188_p2), %v672_v1  ;;  %642 = vmatprep.mubr.msk.f32.mxu0 (!%p188_p2), %vm673_vm1, %v672_v1  ;;  %vm257_vm2 = vcmask (!%p188_p2), 31744   ;;  %vm415_vm3 = vcmask (!%p188_p2), 1041408   ;;  %vm411_vm4 = vcmask (!%p188_p2), 15360  }
   0x7   : > { %641 = vmatpush3.msk.msra.mxu0 (!%p188_p2), %vm334_vm0, %v329_v0  ;;  %645 = vmatprep.subr.mxu1 (!%p188_p2), %v672_v1 }
   0x8   : > { %647 = vmatprep.mubr.msk.f32.mxu1 (!%p188_p2), %vm673_vm1, %v672_v1 }
   0xd   : > { %s1008_s19 = smov (!%p215_p3, %s618_s19), 1 }
   0xe   : > { %s634_s22 = sshll.u32 %s1008_s19, 8 }
   0xf   : > { %s723_s25 = scalar_lea.vmem %s1001_s0, %s634_s22  ;;  %s900_s9 = scalar_lea.vmem %s1006_s5, %s634_s22 }
  0x10   : > { %v726_v2 = vld [vmem:[%s723_s25] sm:$0xff]  ;;  %v729_v3 = vld [vmem:[%s723_s25 + $0x8] sm:$0xff]  ;;  %v732_v4 = vld [vmem:[%s723_s25 + $0x10] sm:$0xff] }
  0x11   : > { %v735_v5 = vld [vmem:[%s723_s25 + $0x18] sm:$0xff]  ;;  %v258_v6 = vsel %vm257_vm2, %v726_v2, 0.0  ;;  %v259_v7 = vsel %vm257_vm2, %v729_v3, 0.0  ;;  %v261_v8 = vsel %vm257_vm2, %v732_v4, 0.0  ;;  %v744_v9 = vld [vmem:[%s723_s25 + $0x20] sm:$0xff]  ;;  %v749_v12 = vld [vmem:[%s723_s25 + $0x28] sm:$0xff] }
  0x12   : > { %v260_v10 = vadd.f32 %v259_v7, %v258_v6  ;;  %v263_v11 = vsel %vm257_vm2, %v735_v5, 0.0  ;;  %v265_v14 = vsel %vm257_vm2, %v744_v9, 0.0  ;;  %v754_v15 = vld [vmem:[%s723_s25 + $0x30] sm:$0xff]  ;;  %v267_v17 = vsel %vm257_vm2, %v749_v12, 0.0  ;;  %v759_v18 = vld [vmem:[%s723_s25 + $0x38] sm:$0xff]  ;;  %v764_v21 = vld [vmem:[%s723_s25 + $0x40] sm:$0xff] }
  0x13   : > { %v269_v20 = vsel %vm257_vm2, %v754_v15, 0.0  ;;  %v271_v23 = vsel %vm257_vm2, %v759_v18, 0.0  ;;  %v769_v24 = vld [vmem:[%s723_s25 + $0x48] sm:$0xff]  ;;  %v273_v26 = vsel %vm257_vm2, %v764_v21, 0.0  ;;  %v774_v27 = vld [vmem:[%s723_s25 + $0x50] sm:$0xff]  ;;  %v779_v30 = vld [vmem:[%s723_s25 + $0x58] sm:$0xff] }
  0x14   : > { %v262_v13 = vadd.f32 %v261_v8, %v260_v10  ;;  %v275_v29 = vsel %vm257_vm2, %v769_v24, 0.0  ;;  %v277_v32 = vsel %vm257_vm2, %v774_v27, 0.0  ;;  %v784_v33 = vld [vmem:[%s723_s25 + $0x60] sm:$0xff]  ;;  %v279_v35 = vsel %vm257_vm2, %v779_v30, 0.0  ;;  %v789_v36 = vld [vmem:[%s723_s25 + $0x68] sm:$0xff]  ;;  %v794_v39 = vld [vmem:[%s723_s25 + $0x70] sm:$0xff] }
  0x15   : > { %v281_v38 = vsel %vm257_vm2, %v784_v33, 0.0  ;;  %v283_v41 = vsel %vm257_vm2, %v789_v36, 0.0  ;;  %v799_v42 = vld [vmem:[%s723_s25 + $0x78] sm:$0xff]  ;;  %v285_v44 = vsel %vm257_vm2, %v794_v39, 0.0  ;;  %v804_v45 = vld [vmem:[%s723_s25 + $0x80] sm:$0xff]  ;;  %v809_v48 = vld [vmem:[%s723_s25 + $0x88] sm:$0xff] }
  0x16   : > { %v264_v16 = vadd.f32 %v263_v11, %v262_v13  ;;  %v287_v47 = vsel %vm257_vm2, %v799_v42, 0.0  ;;  %v289_v50 = vsel %vm257_vm2, %v804_v45, 0.0  ;;  %v814_v51 = vld [vmem:[%s723_s25 + $0x90] sm:$0xff]  ;;  %v291_v53 = vsel %vm257_vm2, %v809_v48, 0.0  ;;  %v819_v54 = vld [vmem:[%s723_s25 + $0x98] sm:$0xff]  ;;  %v824_v57 = vld [vmem:[%s723_s25 + $0xa0] sm:$0xff] }
  0x17   : > { %v293_v56 = vsel %vm257_vm2, %v814_v51, 0.0  ;;  %v295_v59 = vsel %vm257_vm2, %v819_v54, 0.0  ;;  %v829_v60 = vld [vmem:[%s723_s25 + $0xa8] sm:$0xff]  ;;  %v297_v62 = vsel %vm257_vm2, %v824_v57, 0.0  ;;  %v834_v63 = vld [vmem:[%s723_s25 + $0xb0] sm:$0xff]  ;;  %v839_v6 = vld [vmem:[%s723_s25 + $0xb8] sm:$0xff] }
  0x18   : > { %v266_v19 = vadd.f32 %v265_v14, %v264_v16  ;;  %v299_v1 = vsel %vm257_vm2, %v829_v60, 0.0  ;;  %v301_v8 = vsel %vm257_vm2, %v834_v63, 0.0  ;;  %v844_v10 = vld [vmem:[%s723_s25 + $0xc0] sm:$0xff]  ;;  %v303_v13 = vsel %vm257_vm2, %v839_v6, 0.0  ;;  %v849_v14 = vld [vmem:[%s723_s25 + $0xc8] sm:$0xff] }
  0x1a   : > { %v268_v22 = vadd.f32 %v267_v17, %v266_v19  ;;  %v305_v17 = vsel %vm257_vm2, %v844_v10, 0.0  ;;  %v854_v19 = vld [vmem:[%s723_s25 + $0xd0] sm:$0xff] }
  0x1c   : > { %v270_v25 = vadd.f32 %v269_v20, %v268_v22  ;;  %v307_v22 = vsel %vm257_vm2, %v849_v14, 0.0 }
  0x1e   : > { %v272_v28 = vadd.f32 %v271_v23, %v270_v25  ;;  %v859_v23 = vld [vmem:[%s723_s25 + $0xd8] sm:$0xff] }
  0x20   : > { %v274_v31 = vadd.f32 %v273_v26, %v272_v28  ;;  %v309_v26 = vsel %vm257_vm2, %v854_v19, 0.0  ;;  %v864_v28 = vld [vmem:[%s723_s25 + $0xe0] sm:$0xff] }
  0x22   : > { %v276_v34 = vadd.f32 %v275_v29, %v274_v31  ;;  %v311_v31 = vsel %vm257_vm2, %v859_v23, 0.0 }
  0x24   : > { %v278_v37 = vadd.f32 %v277_v32, %v276_v34  ;;  %v869_v32 = vld [vmem:[%s723_s25 + $0xe8] sm:$0xff] }
  0x26   : > { %v280_v40 = vadd.f32 %v279_v35, %v278_v37  ;;  %v313_v35 = vsel %vm257_vm2, %v864_v28, 0.0  ;;  %v874_v37 = vld [vmem:[%s723_s25 + $0xf0] sm:$0xff] }
  0x28   : > { %v282_v43 = vadd.f32 %v281_v38, %v280_v40  ;;  %v315_v40 = vsel %vm257_vm2, %v869_v32, 0.0 }
  0x2a   : > { %v284_v46 = vadd.f32 %v283_v41, %v282_v43  ;;  %v879_v41 = vld [vmem:[%s723_s25 + $0xf8] sm:$0xff] }
  0x2c   : > { %v286_v49 = vadd.f32 %v285_v44, %v284_v46  ;;  %v317_v44 = vsel %vm257_vm2, %v874_v37, 0.0 }
  0x2e   : > { %v288_v52 = vadd.f32 %v287_v47, %v286_v49  ;;  %v319_v47 = vsel %vm257_vm2, %v879_v41, 0.0 }
  0x30   : > { %v290_v55 = vadd.f32 %v289_v50, %v288_v52 }
  0x32   : > { %v292_v58 = vadd.f32 %v291_v53, %v290_v55 }
  0x34   : > { %v294_v61 = vadd.f32 %v293_v56, %v292_v58 }
  0x36   : > { %v296_v0 = vadd.f32 %v295_v59, %v294_v61 }
  0x38   : > { %v298_v7 = vadd.f32 %v297_v62, %v296_v0  ;;  %v409_v62 = vld [vmem:[%s1004_s3] sm:$0x3] }
  0x39   : > { %646 = vmatpush3.msk.msra.mxu1 %vm415_vm3, %v409_v62  ;;  %v330_v0 = vld [vmem:[%s1003_s2] sm:$0x1] }
  0x3a   : > { %v300_v11 = vadd.f32 %v299_v1, %v298_v7 }
  0x3c   : > { %v302_v16 = vadd.f32 %v301_v8, %v300_v11 }
  0x3e   : > { %v304_v20 = vadd.f32 %v303_v13, %v302_v16  ;;  %v410_v13 = vld [vmem:[%s1005_s4] sm:$0x1] }
  0x40   : > { %v306_v25 = vadd.f32 %v305_v17, %v304_v20 }
  0x42   : > { %v308_v29 = vadd.f32 %v307_v22, %v306_v25 }
  0x44   : > { %v310_v34 = vadd.f32 %v309_v26, %v308_v29  ;;  %v495_v29 = vlaneseq }
  0x46   : > { %v312_v38 = vadd.f32 %v311_v31, %v310_v34  ;;  %v496_v31 = vshrl.u32 %v495_v29, 7 }
  0x48   : > { %v314_v43 = vadd.f32 %v313_v35, %v312_v38  ;;  %v497_v34 = vsub.s32 0, %v496_v31 }
  0x4a   : > { %v316_v46 = vadd.f32 %v315_v40, %v314_v43 }
  0x4c   : > { %v318_v49 = vadd.f32 %v317_v44, %v316_v46 }
  0x4e   : > { %v320_v50 = vadd.f32 %v319_v47, %v318_v49 }
  0x50   : > { %v321_v52 = vrot.slane %v320_v50, 4 }
  0x52   : > { %v322_v53 = vadd.f32 %v321_v52, %v320_v50 }
  0x54   : > { %v323_v55 = vrot.slane %v322_v53, 2 }
  0x56   : > { %v324_v56 = vadd.f32 %v323_v55, %v322_v53 }
  0x58   : > { %v325_v58 = vrot.slane %v324_v56, 1 }
  0x5a   : > { %v326_v59 = vadd.f32 %v325_v58, %v324_v56 }
  0x5c   : > { %v328_v61 = vmul.f32 0.00390625, %v326_v59 }
  0x5e   : > { %643 = vmatmul.mubr.msk.f32.vlgmr.msra.gmra.mrb[0].mxu0 %vm257_vm2, %v328_v61 }
 0x131   : > { %v404_v1 = vpop.f32.mrb[0].mxu0 }
 0x132   : > { %v405_v7 = vadd.f32 %v404_v1, %v330_v0  ;;  %v644_v8 = vpop.f32.mrb[1].mxu0 }
 0x134   : > { %v408_v11 = vmax.f32 %v405_v7, 0.0 }
 0x136   : > { %648 = vmatmul.mubr.msk.f32.vlgmr.msra.gmra.mrb[0].mxu1 %vm411_vm4, %v408_v11 }
 0x209   : > { %v485_v16 = vpop.f32.mrb[0].mxu1 }
 0x20a   : > { %v486_v17 = vadd.f32 %v485_v16, %v410_v13  ;;  %v649_v20 = vpop.f32.mrb[1].mxu1 }
 0x20c   : > { %v631_v22 = vmul.f32 -1.442695, %v486_v17 }
 0x20e   : > { %660 = vpow2.f32 %v631_v22 }
 0x218   : > { %v661_v25 = vpop.eup %660 }
 0x219   : > { %v492_v26 = vadd.f32 1.0, %v661_v25 }
 0x21b   : > { %662 = vrcp.f32 %v492_v26 }
 0x225   : > { %v663_v35 = vpop.eup %662 }
 0x226   : > { %v498_v38 = vrot.slane %v663_v35, %v497_v34 }
 0x228   : > { %v499_v40 = vmul.f32 %v498_v38, %v726_v2  ;;  %v500_v43 = vmul.f32 %v498_v38, %v729_v3  ;;  %v501_v44 = vmul.f32 %v498_v38, %v732_v4  ;;  %v502_v46 = vmul.f32 %v498_v38, %v735_v5 }
 0x229   : > { %v503_v47 = vmul.f32 %v498_v38, %v744_v9  ;;  %v504_v49 = vmul.f32 %v498_v38, %v749_v12  ;;  %v505_v50 = vmul.f32 %v498_v38, %v754_v15  ;;  %v506_v52 = vmul.f32 %v498_v38, %v759_v18 }
 0x22a   : > { %v507_v2 = vmul.f32 %v498_v38, %v764_v21  ;;  %v508_v3 = vmul.f32 %v498_v38, %v769_v24  ;;  %v509_v4 = vmul.f32 %v498_v38, %v774_v27  ;;  %v510_v5 = vmul.f32 %v498_v38, %v779_v30  ;;  %531 = vst.msk [vmem:[%s900_s9] sm:$0xff] %vm257_vm2, %v499_v40 }
 0x22b   : > { %532 = vst.msk [vmem:[%s900_s9 + $0x8] sm:$0xff] %vm257_vm2, %v500_v43  ;;  %533 = vst.msk [vmem:[%s900_s9 + $0x10] sm:$0xff] %vm257_vm2, %v501_v44  ;;  %v511_v9 = vmul.f32 %v498_v38, %v784_v33  ;;  %v512_v12 = vmul.f32 %v498_v38, %v789_v36  ;;  %v513_v15 = vmul.f32 %v498_v38, %v794_v39 }
 0x22c   : > { %534 = vst.msk [vmem:[%s900_s9 + $0x18] sm:$0xff] %vm257_vm2, %v502_v46  ;;  %v514_v18 = vmul.f32 %v498_v38, %v799_v42  ;;  %535 = vst.msk [vmem:[%s900_s9 + $0x20] sm:$0xff] %vm257_vm2, %v503_v47  ;;  %v515_v21 = vmul.f32 %v498_v38, %v804_v45  ;;  %v516_v24 = vmul.f32 %v498_v38, %v809_v48 }
 0x22d   : > { %536 = vst.msk [vmem:[%s900_s9 + $0x28] sm:$0xff] %vm257_vm2, %v504_v49  ;;  %537 = vst.msk [vmem:[%s900_s9 + $0x30] sm:$0xff] %vm257_vm2, %v505_v50  ;;  %v517_v27 = vmul.f32 %v498_v38, %v814_v51  ;;  %v518_v30 = vmul.f32 %v498_v38, %v819_v54  ;;  %v519_v33 = vmul.f32 %v498_v38, %v824_v57 }
 0x22e   : > { %538 = vst.msk [vmem:[%s900_s9 + $0x38] sm:$0xff] %vm257_vm2, %v506_v52  ;;  %539 = vst.msk [vmem:[%s900_s9 + $0x40] sm:$0xff] %vm257_vm2, %v507_v2  ;;  %v520_v36 = vmul.f32 %v498_v38, %v829_v60  ;;  %v521_v39 = vmul.f32 %v498_v38, %v834_v63  ;;  %v522_v42 = vmul.f32 %v498_v38, %v839_v6 }
 0x22f   : > { %540 = vst.msk [vmem:[%s900_s9 + $0x48] sm:$0xff] %vm257_vm2, %v508_v3  ;;  %541 = vst.msk [vmem:[%s900_s9 + $0x50] sm:$0xff] %vm257_vm2, %v509_v4  ;;  %v523_v45 = vmul.f32 %v498_v38, %v844_v10  ;;  %v524_v48 = vmul.f32 %v498_v38, %v849_v14  ;;  %v525_v51 = vmul.f32 %v498_v38, %v854_v19 }
 0x230   : > { %542 = vst.msk [vmem:[%s900_s9 + $0x58] sm:$0xff] %vm257_vm2, %v510_v5  ;;  %543 = vst.msk [vmem:[%s900_s9 + $0x60] sm:$0xff] %vm257_vm2, %v511_v9  ;;  %v526_v54 = vmul.f32 %v498_v38, %v859_v23  ;;  %v527_v57 = vmul.f32 %v498_v38, %v864_v28  ;;  %v528_v60 = vmul.f32 %v498_v38, %v869_v32 }
 0x231   : > { %544 = vst.msk [vmem:[%s900_s9 + $0x68] sm:$0xff] %vm257_vm2, %v512_v12  ;;  %545 = vst.msk [vmem:[%s900_s9 + $0x70] sm:$0xff] %vm257_vm2, %v513_v15  ;;  %v529_v63 = vmul.f32 %v498_v38, %v874_v37  ;;  %v530_v6 = vmul.f32 %v498_v38, %v879_v41 }
 0x232   : > { %546 = vst.msk [vmem:[%s900_s9 + $0x78] sm:$0xff] %vm257_vm2, %v514_v18  ;;  %547 = vst.msk [vmem:[%s900_s9 + $0x80] sm:$0xff] %vm257_vm2, %v515_v21 }
 0x233   : > { %548 = vst.msk [vmem:[%s900_s9 + $0x88] sm:$0xff] %vm257_vm2, %v516_v24  ;;  %549 = vst.msk [vmem:[%s900_s9 + $0x90] sm:$0xff] %vm257_vm2, %v517_v27 }
 0x234   : > { %550 = vst.msk [vmem:[%s900_s9 + $0x98] sm:$0xff] %vm257_vm2, %v518_v30  ;;  %551 = vst.msk [vmem:[%s900_s9 + $0xa0] sm:$0xff] %vm257_vm2, %v519_v33 }
 0x235   : > { %552 = vst.msk [vmem:[%s900_s9 + $0xa8] sm:$0xff] %vm257_vm2, %v520_v36  ;;  %553 = vst.msk [vmem:[%s900_s9 + $0xb0] sm:$0xff] %vm257_vm2, %v521_v39 }
 0x236   : > { %554 = vst.msk [vmem:[%s900_s9 + $0xb8] sm:$0xff] %vm257_vm2, %v522_v42  ;;  %555 = vst.msk [vmem:[%s900_s9 + $0xc0] sm:$0xff] %vm257_vm2, %v523_v45 }
 0x237   : > { %556 = vst.msk [vmem:[%s900_s9 + $0xc8] sm:$0xff] %vm257_vm2, %v524_v48  ;;  %557 = vst.msk [vmem:[%s900_s9 + $0xd0] sm:$0xff] %vm257_vm2, %v525_v51 }
 0x238   : > { %558 = vst.msk [vmem:[%s900_s9 + $0xd8] sm:$0xff] %vm257_vm2, %v526_v54  ;;  %559 = vst.msk [vmem:[%s900_s9 + $0xe0] sm:$0xff] %vm257_vm2, %v527_v57 }
 0x239   : > { %560 = vst.msk [vmem:[%s900_s9 + $0xe8] sm:$0xff] %vm257_vm2, %v528_v60  ;;  %561 = vst.msk [vmem:[%s900_s9 + $0xf0] sm:$0xff] %vm257_vm2, %v529_v63 }
 0x23a   : > { %562 = vst.msk [vmem:[%s900_s9 + $0xf8] sm:$0xff] %vm257_vm2, %v530_v6 }
 0x23b PF: > { %s15_s18 = sadd.s32 1, %s670_s18  }
 0x23c   : > { %p12_p4 = scmp.ge.s32.totalorder %s15_s18, 4  }
 0x23e   :  { %14 = sbr.rel (!%p12_p4) target bundleno = 1 (0x1), region = 70 }

</bundles_post_ra>
